<compile_context>
chip_gen: v7x
topology: tpu7x:2x2x1
jax: 0.10.0
libtpu: 0.0.40
codegen_flags: <defaults>
</compile_context>

<pallas_src>
import functools

import numpy as np
import jax
import jax.numpy as jnp
from jax.experimental import pallas as pl
from jax.experimental.pallas import tpu as pltpu


def _round_up(x, m):
    return ((x + m - 1) // m) * m


def _proto_loss_kernel(n_classes, n_query, d_real, cq_real, compute_dtype,
                       supp_ref, query_ref, logp_ref, corr_ref):
    """One query tile: logits -> log-softmax -> partial NLL / correct counts."""
    tile_q = query_ref.shape[0]
    n_support = supp_ref.shape[0]

    # --- Class prototypes: mean over the static shot axis (VPU adds only). ---
    protos = supp_ref[0]
    for s in range(1, n_support):
        protos = protos + supp_ref[s]
    protos = protos * (1.0 / n_support)                            # (C_pad, D_pad) f32

    # --- Squared prototype norms (lane reduction), mean-centred over the real
    # classes.  Only the per-class part of the norm matters for the softmax;
    # the dropped mean (and the per-query ||q||^2) are row-constant and cancel
    # exactly in log_softmax.  Centring keeps the value folded into the (maybe
    # bf16) matmul small, so the fast path stays accurate.
    pn = jnp.sum(protos * protos, axis=-1, keepdims=True)          # (C_pad, 1)
    pn_bar = jnp.sum(pn, axis=0, keepdims=True) * (1.0 / n_classes)  # (1, 1)
    delta = pn - pn_bar                                            # (C_pad, 1)

    # --- logits[i, c] = 2 q_i . p_c - delta_c via ONE matmul: the -delta term
    # rides in spare lane `d_real`, which is guaranteed zero padding in both
    # operands (D was padded to a multiple of 128 with >= 1 spare lane). ---
    lane_p = jax.lax.broadcasted_iota(jnp.int32, protos.shape, 1)
    b_mat = jnp.where(lane_p == d_real, -delta, 2.0 * protos)      # (C_pad, D_pad)

    q = query_ref[...]
    lane_q = jax.lax.broadcasted_iota(jnp.int32, q.shape, 1)
    a_mat = jnp.where(lane_q == d_real, 1.0, q)                    # (TQ, D_pad)

    logits = jax.lax.dot_general(
        a_mat.astype(compute_dtype), b_mat.astype(compute_dtype),
        (((1,), (1,)), ((), ())),
        preferred_element_type=jnp.float32)                        # (TQ, C_pad)

    c_pad = logits.shape[1]
    col = jax.lax.broadcasted_iota(jnp.int32, logits.shape, 1)
    row = (jax.lax.broadcasted_iota(jnp.int32, logits.shape, 0)
           + pl.program_id(0) * tile_q)                            # global query idx

    # Mask padded class columns out of the softmax / argmax.
    logits = jnp.where(col < n_classes, logits, -1e30)

    # log_softmax along the class (lane) axis.
    m = jnp.max(logits, axis=-1, keepdims=True)
    lse = jnp.log(jnp.sum(jnp.exp(logits - m), axis=-1, keepdims=True)) + m
    log_p = logits - lse

    # One-hot "col is the true class of this query row" without an int divide.
    sel = (row >= col * n_query) & (row < (col + 1) * n_query) & (col < n_classes)

    # Partial NLL numerator (sum of selected log-probabilities) for this tile.
    picked = jnp.sum(jnp.where(sel, log_p, 0.0))

    # Accuracy: argmax with first-index tie-break (matches torch.max), counted
    # only for real (non-padded) query rows.
    tgt = jnp.min(jnp.where(sel, col, c_pad), axis=-1, keepdims=True)       # (TQ,1)
    valid = row[:, :1] < cq_real                                            # (TQ,1)
    maxv = jnp.max(log_p, axis=-1, keepdims=True)
    yhat = jnp.min(jnp.where(log_p == maxv, col, c_pad), axis=-1, keepdims=True)
    n_correct = jnp.sum(jnp.where((yhat == tgt) & valid, 1.0, 0.0))

    # Lane-dense (1, 1, 128) partial-sum output blocks (replicated scalar).
    logp_ref[...] = jnp.full(logp_ref.shape, picked, jnp.float32)
    corr_ref[...] = jnp.full(corr_ref.shape, n_correct, jnp.float32)


def _proto_loss_pallas(supp, query, n_classes, n_query, n_support, d,
                       compute_dtype, max_query_tile=256):
    """Pad to lane/sublane-friendly shapes and launch the tiled kernel."""
    d_pad = _round_up(d + 1, 128)      # >=1 spare lane carries the -||p||^2 term
    c_pad = _round_up(n_classes, 8)
    cq = n_classes * n_query
    tile_q = min(max_query_tile, _round_up(cq, 8))
    cq_pad = _round_up(cq, tile_q)
    n_tiles = cq_pad // tile_q

    # Zero padding changes no dot product / squared norm; padded classes & rows
    # are masked inside the kernel.
    supp_p = jnp.zeros((n_support, c_pad, d_pad), jnp.float32)
    supp_p = supp_p.at[:, :n_classes, :d].set(
        supp.reshape(n_classes, n_support, d).transpose(1, 0, 2))
    query_p = jnp.zeros((cq_pad, d_pad), jnp.float32)
    query_p = query_p.at[:cq, :d].set(query)

    # VMEM budget: resident support slab + double-buffered query tiles +
    # in-kernel temporaries, with generous headroom (fits v5e/v6e/v7x limits).
    # TODO(synk): for very large D add an "arbitrary" reduction grid axis over
    # D-chunks so residency stays within v7x's 64 MiB / v5e's scoped VMEM.
    approx_bytes = 4 * (supp_p.size + 2 * tile_q * d_pad
                        + 2 * c_pad * d_pad + 4 * tile_q * c_pad)
    vmem_limit = int(min(64 * 1024 * 1024, max(16 * 1024 * 1024, 4 * approx_bytes)))

    kernel = functools.partial(_proto_loss_kernel, n_classes, n_query, d, cq,
                               compute_dtype)
    logp_parts, corr_parts = pl.pallas_call(
        kernel,
        out_shape=(jax.ShapeDtypeStruct((n_tiles, 1, 128), jnp.float32),
                   jax.ShapeDtypeStruct((n_tiles, 1, 128), jnp.float32)),
        grid=(n_tiles,),
        in_specs=[
            # Support slab: constant block index -> stays VMEM-resident.
            pl.BlockSpec((n_support, c_pad, d_pad), lambda i: (0, 0, 0)),
            # Query rows: tiled along the (parallel) grid axis.
            pl.BlockSpec((tile_q, d_pad), lambda i: (i, 0)),
        ],
        out_specs=(
            pl.BlockSpec((1, 1, 128), lambda i: (i, 0, 0)),
            pl.BlockSpec((1, 1, 128), lambda i: (i, 0, 0)),
        ),
        compiler_params=pltpu.CompilerParams(
            dimension_semantics=("parallel",),
            vmem_limit_bytes=vmem_limit),
    )(supp_p, query_p)

    # Tiny final reduction over per-tile partial sums in plain JAX.
    loss = -jnp.sum(logp_parts[:, 0, 0]) / jnp.float32(cq)
    acc = jnp.sum(corr_parts[:, 0, 0]) / jnp.float32(cq)
    return loss, acc


def prototypical_loss(inputs, target, n_support, *, compute_dtype=jnp.float32):
    """Forward pass of the PyTorch PrototypicalLoss module: returns (loss, acc)."""
    # Host-side, data-dependent index bookkeeping (the reference moves tensors
    # to CPU for exactly this); torch.unique / nonzero have no static-shape
    # Pallas equivalent, so they stay in glue code.
    # TODO(synk): hoist this (and the device_get sync) out of the per-step path
    # when the episode structure is fixed across training steps.
    t = np.asarray(jax.device_get(target))
    classes = np.unique(t)
    n_classes = int(classes.shape[0])
    n_query = int((t == classes[0]).sum()) - n_support

    support_idxs = np.concatenate(
        [np.nonzero(t == c)[0][:n_support] for c in classes])       # (C*S,)
    query_idxs = np.concatenate(
        [np.nonzero(t == c)[0][n_support:] for c in classes])       # (C*Q,)

    x = jnp.asarray(inputs, jnp.float32)
    x = x.reshape(x.shape[0], -1)
    d = x.shape[1]

    # TODO(synk): fold these row gathers into the kernel (scalar-prefetch row
    # index_map / manual DMA gather) to avoid one extra HBM pass over x.
    supp = x[jnp.asarray(support_idxs)]                              # (C*S, D)
    query = x[jnp.asarray(query_idxs)]                               # (C*Q, D)

    return _proto_loss_pallas(supp, query, n_classes, n_query, n_support, d,
                              compute_dtype)


class PrototypicalLoss:
    """Mirror of the PyTorch module: stores n_support, forward -> (loss, acc)."""

    def __init__(self, n_support):
        self.n_support = n_support

    def __call__(self, inputs, target):
        return prototypical_loss(inputs, target, self.n_support)


def _reference_prototypical_loss(x, t, n_support):
    """Pure-numpy reference, line-by-line port of the torch implementation."""
    x = np.asarray(x, dtype=np.float32)
    t = np.asarray(t)
    classes = np.unique(t)
    n_classes = len(classes)
    n_query = int((t == classes[0]).sum()) - n_support
    support_idxs = [np.nonzero(t == c)[0][:n_support] for c in classes]
    prototypes = np.stack([x[idx].mean(0) for idx in support_idxs])
    query_idxs = np.concatenate([np.nonzero(t == c)[0][n_support:] for c in classes])
    qs = x[query_idxs]
    dists = ((qs[:, None, :] - prototypes[None, :, :]) ** 2).sum(-1)
    logits = -dists
    logits = logits - logits.max(1, keepdims=True)
    log_p = logits - np.log(np.exp(logits).sum(1, keepdims=True))
    log_p = log_p.reshape(n_classes, n_query, -1)
    loss = -np.mean([log_p[c, q, c] for c in range(n_classes) for q in range(n_query)])
    yhat = log_p.argmax(2)
    acc = (yhat == np.arange(n_classes)[:, None]).mean()
    return np.float32(loss), np.float32(acc)


if __name__ == "__main__":
    key = jax.random.PRNGKey(0)

    # Small episode: 4-way, 2-shot, 3 queries/class, 32-dim embeddings.
    n_classes, n_support, n_query, dim = 4, 2, 3, 32
    n_total = n_classes * (n_support + n_query)                 # 20 samples

    k_emb, k_perm = jax.random.split(key)
    embeddings = jax.random.normal(k_emb, (n_total, dim), dtype=jnp.float32)
    base_labels = jnp.repeat(jnp.arange(n_classes, dtype=jnp.int32),
                             n_support + n_query)
    target = jax.random.permutation(k_perm, base_labels)

    loss_fn = PrototypicalLoss(n_support)
    loss, acc = loss_fn(embeddings, target)
    loss = jax.block_until_ready(loss)
    acc = jax.block_until_ready(acc)

    ref_loss, ref_acc = _reference_prototypical_loss(
        jax.device_get(embeddings), jax.device_get(target), n_support)
    assert np.allclose(np.asarray(loss), ref_loss, atol=1e-3, rtol=1e-3), (loss, ref_loss)
    assert np.allclose(np.asarray(acc), ref_acc, atol=1e-6), (acc, ref_acc)

    # bf16 matmul path (the v6e/v7x MXU fast path): loose tolerance, since the
    # q.proto products are rounded to bfloat16 before the f32 accumulation.
    loss16, acc16 = prototypical_loss(embeddings, target, n_support,
                                      compute_dtype=jnp.bfloat16)
    loss16 = jax.block_until_ready(loss16)
    acc16 = jax.block_until_ready(acc16)
    assert abs(float(loss16) - float(ref_loss)) < 0.1, (loss16, ref_loss)
    assert abs(float(acc16) - float(ref_acc)) < 0.35, (acc16, ref_acc)

    # Larger episode exercising class/row padding and the multi-tile grid
    # (20-way, 5-shot, 15 queries -> 300 query rows -> 2 query tiles of 256).
    n_classes2, n_support2, n_query2, dim2 = 20, 5, 15, 64
    n_total2 = n_classes2 * (n_support2 + n_query2)             # 400 samples
    k_emb2, k_perm2 = jax.random.split(jax.random.PRNGKey(1))
    emb2 = jax.random.normal(k_emb2, (n_total2, dim2), dtype=jnp.float32)
    labels2 = jnp.repeat(jnp.arange(n_classes2, dtype=jnp.int32),
                         n_support2 + n_query2)
    target2 = jax.random.permutation(k_perm2, labels2)

    loss2, acc2 = prototypical_loss(emb2, target2, n_support2)
    loss2 = jax.block_until_ready(loss2)
    acc2 = jax.block_until_ready(acc2)
    ref_loss2, ref_acc2 = _reference_prototypical_loss(
        jax.device_get(emb2), jax.device_get(target2), n_support2)
    assert np.allclose(np.asarray(loss2), ref_loss2, atol=1e-3, rtol=1e-3), (loss2, ref_loss2)
    # Allow a couple of argmax flips from float-formulation differences at near-ties.
    assert abs(float(acc2) - float(ref_acc2)) <= 2.0 / (n_classes2 * n_query2) + 1e-6, (
        acc2, ref_acc2)

    print("KERNEL_OK")
</pallas_src>

<mosaic_0001>
module attributes {stable_mosaic.version = 11 : i64} {
  func.func @_proto_loss_kernel(%arg0: i32, %arg1: memref<2x8x128xf32, #tpu.memory_space<vmem>>, %arg2: memref<16x128xf32, #tpu.memory_space<vmem>>, %arg3: memref<1x1x128xf32, #tpu.memory_space<vmem>>, %arg4: memref<1x1x128xf32, #tpu.memory_space<vmem>>) attributes {dimension_semantics = [#tpu.dimension_semantics<parallel>], iteration_bounds = array<i64: 1>, scalar_prefetch = 0 : i64, scratch_operands = 0 : i64, tpu.core_type = #tpu.core_type<tc>, window_params = [{pipeline_mode = #tpu.pipeline_mode<synchronous>, transform_indices = @transform_0, window_bounds = array<i64: 2, 8, 128>}, {transform_indices = @transform_1, window_bounds = array<i64: 16, 128>}, {transform_indices = @transform_2, window_bounds = array<i64: 1, 1, 128>}, {transform_indices = @transform_3, window_bounds = array<i64: 1, 1, 128>}]} {
    %c0 = arith.constant 0 : index
    %c0_0 = arith.constant 0 : index
    %c0_1 = arith.constant 0 : index
    %0 = vector.load %arg1[%c0, %c0_0, %c0_1] : memref<2x8x128xf32, #tpu.memory_space<vmem>>, vector<1x8x128xf32>
    %1 = vector.shape_cast %0 : vector<1x8x128xf32> to vector<8x128xf32>
    %c1 = arith.constant 1 : index
    %c0_2 = arith.constant 0 : index
    %c0_3 = arith.constant 0 : index
    %2 = vector.load %arg1[%c1, %c0_2, %c0_3] : memref<2x8x128xf32, #tpu.memory_space<vmem>>, vector<1x8x128xf32>
    %3 = vector.shape_cast %2 : vector<1x8x128xf32> to vector<8x128xf32>
    %4 = arith.addf %1, %3 : vector<8x128xf32>
    %cst = arith.constant 5.000000e-01 : f32
    %5 = vector.broadcast %cst : f32 to vector<8x128xf32>
    %6 = arith.mulf %4, %5 : vector<8x128xf32>
    %7 = arith.mulf %6, %6 : vector<8x128xf32>
    %cst_4 = arith.constant dense<0.000000e+00> : vector<8xf32>
    %8 = vector.multi_reduction <add>, %7, %cst_4 [1] : vector<8x128xf32> to vector<8xf32>
    %9 = vector.shape_cast %8 : vector<8xf32> to vector<8x1xf32>
    %cst_5 = arith.constant dense<0.000000e+00> : vector<1xf32>
    %10 = vector.multi_reduction <add>, %9, %cst_5 [0] : vector<8x1xf32> to vector<1xf32>
    %11 = vector.shape_cast %10 : vector<1xf32> to vector<1x1xf32>
    %cst_6 = arith.constant 2.500000e-01 : f32
    %12 = vector.broadcast %cst_6 : f32 to vector<1x1xf32>
    %13 = arith.mulf %11, %12 : vector<1x1xf32>
    %14 = vector.broadcast %13 : vector<1x1xf32> to vector<8x1xf32>
    %15 = arith.subf %9, %14 : vector<8x1xf32>
    %16 = tpu.iota {dimensions = array<i32: 1>} : vector<8x128xi32>
    %c32_i32 = arith.constant 32 : i32
    %17 = vector.broadcast %c32_i32 : i32 to vector<8x128xi32>
    %18 = arith.cmpi eq, %16, %17 : vector<8x128xi32>
    %cst_7 = arith.constant 0.000000e+00 : f32
    %19 = vector.broadcast %cst_7 : f32 to vector<8x1xf32>
    %20 = arith.subf %19, %15 : vector<8x1xf32>
    %cst_8 = arith.constant 2.000000e+00 : f32
    %21 = vector.broadcast %cst_8 : f32 to vector<8x128xf32>
    %22 = arith.mulf %21, %6 : vector<8x128xf32>
    %23 = vector.shape_cast %20 : vector<8x1xf32> to vector<8x1xf32>
    %24 = vector.broadcast %23 : vector<8x1xf32> to vector<8x128xf32>
    %25 = arith.select %18, %24, %22 : vector<8x128xi1>, vector<8x128xf32>
    %c0_9 = arith.constant 0 : index
    %c0_10 = arith.constant 0 : index
    %26 = vector.load %arg2[%c0_9, %c0_10] : memref<16x128xf32, #tpu.memory_space<vmem>>, vector<16x128xf32>
    %27 = tpu.iota {dimensions = array<i32: 1>} : vector<16x128xi32>
    %c32_i32_11 = arith.constant 32 : i32
    %28 = vector.broadcast %c32_i32_11 : i32 to vector<16x128xi32>
    %29 = arith.cmpi eq, %27, %28 : vector<16x128xi32>
    %cst_12 = arith.constant 1.000000e+00 : f32
    %30 = vector.broadcast %cst_12 : f32 to vector<16x128xf32>
    %31 = arith.select %29, %30, %26 : vector<16x128xi1>, vector<16x128xf32>
    %cst_13 = arith.constant dense<0.000000e+00> : vector<16x8xf32>
    %32 = tpu.matmul %31, %25, %cst_13 {dimension_numbers = #tpu.dot_dimension_numbers<[1], [1], [0], [0], [0, 0, 1, 0], [], []>} : vector<16x128xf32>, vector<8x128xf32>, vector<16x8xf32> -> vector<16x8xf32>
    %33 = tpu.iota {dimensions = array<i32: 1>} : vector<16x8xi32>
    %34 = tpu.iota {dimensions = array<i32: 0>} : vector<16x8xi32>
    %c16_i32 = arith.constant 16 : i32
    %35 = arith.muli %arg0, %c16_i32 : i32
    %36 = vector.broadcast %35 : i32 to vector<16x8xi32>
    %37 = arith.addi %34, %36 : vector<16x8xi32>
    %c4_i32 = arith.constant 4 : i32
    %38 = vector.broadcast %c4_i32 : i32 to vector<16x8xi32>
    %39 = arith.cmpi slt, %33, %38 : vector<16x8xi32>
    %cst_14 = arith.constant -1.000000e+30 : f32
    %40 = vector.broadcast %cst_14 : f32 to vector<16x8xf32>
    %41 = arith.select %39, %32, %40 : vector<16x8xi1>, vector<16x8xf32>
    %cst_15 = arith.constant dense<0xFF800000> : vector<16xf32>
    %42 = vector.multi_reduction <maximumf>, %41, %cst_15 [1] : vector<16x8xf32> to vector<16xf32>
    %43 = vector.shape_cast %42 : vector<16xf32> to vector<16x1xf32>
    %44 = vector.broadcast %43 : vector<16x1xf32> to vector<16x8xf32>
    %45 = arith.subf %41, %44 : vector<16x8xf32>
    %46 = math.exp %45 : vector<16x8xf32>
    %cst_16 = arith.constant dense<0.000000e+00> : vector<16xf32>
    %47 = vector.multi_reduction <add>, %46, %cst_16 [1] : vector<16x8xf32> to vector<16xf32>
    %48 = vector.shape_cast %47 : vector<16xf32> to vector<16x1xf32>
    %49 = math.log %48 : vector<16x1xf32>
    %50 = arith.addf %49, %43 : vector<16x1xf32>
    %51 = vector.broadcast %50 : vector<16x1xf32> to vector<16x8xf32>
    %52 = arith.subf %41, %51 : vector<16x8xf32>
    %c3_i32 = arith.constant 3 : i32
    %53 = vector.broadcast %c3_i32 : i32 to vector<16x8xi32>
    %54 = arith.muli %33, %53 : vector<16x8xi32>
    %55 = arith.cmpi sge, %37, %54 : vector<16x8xi32>
    %c1_i32 = arith.constant 1 : i32
    %56 = vector.broadcast %c1_i32 : i32 to vector<16x8xi32>
    %57 = arith.addi %33, %56 : vector<16x8xi32>
    %c3_i32_17 = arith.constant 3 : i32
    %58 = vector.broadcast %c3_i32_17 : i32 to vector<16x8xi32>
    %59 = arith.muli %57, %58 : vector<16x8xi32>
    %60 = arith.cmpi slt, %37, %59 : vector<16x8xi32>
    %61 = arith.andi %55, %60 : vector<16x8xi1>
    %c4_i32_18 = arith.constant 4 : i32
    %62 = vector.broadcast %c4_i32_18 : i32 to vector<16x8xi32>
    %63 = arith.cmpi slt, %33, %62 : vector<16x8xi32>
    %64 = arith.andi %61, %63 : vector<16x8xi1>
    %cst_19 = arith.constant 0.000000e+00 : f32
    %65 = vector.broadcast %cst_19 : f32 to vector<16x8xf32>
    %66 = arith.select %64, %52, %65 : vector<16x8xi1>, vector<16x8xf32>
    %67 = vector.shape_cast %66 : vector<16x8xf32> to vector<1x16x8xf32>
    %cst_20 = arith.constant dense<0.000000e+00> : vector<1xf32>
    %68 = vector.multi_reduction <add>, %67, %cst_20 [1, 2] : vector<1x16x8xf32> to vector<1xf32>
    %69 = vector.shape_cast %68 : vector<1xf32> to vector<1x1x1xf32>
    %70 = vector.extract %69[0, 0, 0] : f32 from vector<1x1x1xf32>
    %c8_i32 = arith.constant 8 : i32
    %71 = vector.broadcast %c8_i32 : i32 to vector<16x8xi32>
    %72 = arith.select %64, %33, %71 : vector<16x8xi1>, vector<16x8xi32>
    %cst_21 = arith.constant dense<2147483647> : vector<16xi32>
    %73 = vector.multi_reduction <minsi>, %72, %cst_21 [1] : vector<16x8xi32> to vector<16xi32>
    %74 = vector.shape_cast %73 : vector<16xi32> to vector<16x1xi32>
    %75 = vector.extract_strided_slice %37 {offsets = [0, 0], sizes = [16, 1], strides = [1, 1]} : vector<16x8xi32> to vector<16x1xi32>
    %c12_i32 = arith.constant 12 : i32
    %76 = vector.broadcast %c12_i32 : i32 to vector<16x1xi32>
    %77 = arith.cmpi slt, %75, %76 : vector<16x1xi32>
    %cst_22 = arith.constant dense<0xFF800000> : vector<16xf32>
    %78 = vector.multi_reduction <maximumf>, %52, %cst_22 [1] : vector<16x8xf32> to vector<16xf32>
    %79 = vector.shape_cast %78 : vector<16xf32> to vector<16x1xf32>
    %80 = vector.broadcast %79 : vector<16x1xf32> to vector<16x8xf32>
    %81 = arith.cmpf oeq, %52, %80 : vector<16x8xf32>
    %c8_i32_23 = arith.constant 8 : i32
    %82 = vector.broadcast %c8_i32_23 : i32 to vector<16x8xi32>
    %83 = arith.select %81, %33, %82 : vector<16x8xi1>, vector<16x8xi32>
    %cst_24 = arith.constant dense<2147483647> : vector<16xi32>
    %84 = vector.multi_reduction <minsi>, %83, %cst_24 [1] : vector<16x8xi32> to vector<16xi32>
    %85 = vector.shape_cast %84 : vector<16xi32> to vector<16x1xi32>
    %86 = arith.cmpi eq, %85, %74 : vector<16x1xi32>
    %87 = arith.andi %86, %77 : vector<16x1xi1>
    %cst_25 = arith.constant 1.000000e+00 : f32
    %cst_26 = arith.constant 0.000000e+00 : f32
    %88 = vector.broadcast %cst_25 : f32 to vector<16x1xf32>
    %89 = vector.broadcast %cst_26 : f32 to vector<16x1xf32>
    %90 = arith.select %87, %88, %89 : vector<16x1xi1>, vector<16x1xf32>
    %91 = vector.shape_cast %90 : vector<16x1xf32> to vector<1x16x1xf32>
    %cst_27 = arith.constant dense<0.000000e+00> : vector<1xf32>
    %92 = vector.multi_reduction <add>, %91, %cst_27 [1, 2] : vector<1x16x1xf32> to vector<1xf32>
    %93 = vector.shape_cast %92 : vector<1xf32> to vector<1x1x1xf32>
    %94 = vector.extract %93[0, 0, 0] : f32 from vector<1x1x1xf32>
    %95 = vector.broadcast %70 : f32 to vector<1x1x128xf32>
    %c0_28 = arith.constant 0 : index
    %c0_29 = arith.constant 0 : index
    %c0_30 = arith.constant 0 : index
    %96 = vector.load %arg3[%c0_28, %c0_29, %c0_30] : memref<1x1x128xf32, #tpu.memory_space<vmem>>, vector<1x1x128xf32>
    tpu.vector_store %arg3[%c0_28, %c0_29, %c0_30], %95 {strides = array<i32>} : memref<1x1x128xf32, #tpu.memory_space<vmem>>, vector<1x1x128xf32>,
    %97 = vector.broadcast %94 : f32 to vector<1x1x128xf32>
    %c0_31 = arith.constant 0 : index
    %c0_32 = arith.constant 0 : index
    %c0_33 = arith.constant 0 : index
    %98 = vector.load %arg4[%c0_31, %c0_32, %c0_33] : memref<1x1x128xf32, #tpu.memory_space<vmem>>, vector<1x1x128xf32>
    tpu.vector_store %arg4[%c0_31, %c0_32, %c0_33], %97 {strides = array<i32>} : memref<1x1x128xf32, #tpu.memory_space<vmem>>, vector<1x1x128xf32>,
    return
  }
  func.func @transform_0(%arg0: i32) -> (i32, i32, i32) {
    %c0_i32 = arith.constant 0 : i32
    %c0_i32_0 = arith.constant 0 : i32
    %c0_i32_1 = arith.constant 0 : i32
    %c0_i32_2 = arith.constant 0 : i32
    return %c0_i32, %c0_i32_0, %c0_i32_1 : i32, i32, i32
  }
  func.func @transform_1(%arg0: i32) -> (i32, i32) {
    %c0_i32 = arith.constant 0 : i32
    %c0_i32_0 = arith.constant 0 : i32
    return %arg0, %c0_i32 : i32, i32
  }
  func.func @transform_2(%arg0: i32) -> (i32, i32, i32) {
    %c0_i32 = arith.constant 0 : i32
    %c0_i32_0 = arith.constant 0 : i32
    %c0_i32_1 = arith.constant 0 : i32
    return %arg0, %c0_i32, %c0_i32_0 : i32, i32, i32
  }
  func.func @transform_3(%arg0: i32) -> (i32, i32, i32) {
    %c0_i32 = arith.constant 0 : i32
    %c0_i32_0 = arith.constant 0 : i32
    %c0_i32_1 = arith.constant 0 : i32
    return %arg0, %c0_i32, %c0_i32_0 : i32, i32, i32
  }
}

</mosaic_0001>

<bundles_post_ra>
// kernel: tpu_custom_call.1
= control target key start
LH: loop header
LB: loop body
LE: loop exit
PB: predicated region body
PF: predicated region fallthrough
CT: control target
= control target key end

     0   :  { %9 = vsyncpa [#allocation3], 0  ;;  %s588_s0 = inlined_call_operand.hbm [shape: f32[2,8,128], index: 0, kind: input, shape index: {}]   ;;  %s589_s1 = inlined_call_operand.hbm [shape: f32[16,128], index: 1, kind: input, shape index: {}]   ;;  %s590_s2 = inlined_call_operand.hbm [shape: f32[1,1,128], index: 2, kind: output, shape index: {0}]   ;;  %s591_s3 = inlined_call_operand.hbm [shape: f32[1,1,128], index: 3, kind: output, shape index: {1}]  }
   0x1   :  { %10 = vsyncpa [#allocation6], 0 }
   0x2   :  { %11 = vsyncpa [#allocation4], 0 }
   0x3   :  { %12 = vsyncpa [#allocation9], 0  ;;  %s456_s12 = smov [#allocation2]   ;;  %s360_s16 = scalar_lea.hbm %s588_s0, 256 }
   0x4   :  { %s18_s13 = sshll.u32 %s456_s12, 4  ;;  %p361_p0 = scmp.ne.s32.totalorder %s588_s0, %s360_s16  ;;  %s19_s13 = int_to_ptr.vmem [resolvable:$true] %s18_s13 }
   0x5   :  { %p364_p1 = scmp.lt.u32.totalorder %s360_s16, %s588_s0 }
   0x7   :  { %p366_p2 = pnand %p364_p1, %p361_p0 }
   0x9   :  { %369 = shalt.err (!%p366_p2)
}
   0xa   :  { %s370_s21 = scalar_lea.vmem %s19_s13, 256  ;;  %p375_p4 = scmp.lt.s32.totalorder %s19_s13, %s19_s13 }
   0xb   :  { %p371_p3 = scmp.ne.s32.totalorder %s19_s13, %s370_s21  ;;  %p376_p5 = scmp.lt.s32.totalorder %s370_s21, %s370_s21 }
   0xd   :  { %p377_p6 = por %p376_p5, %p375_p4 }
   0xf   :  { %p378_p7 = pnand %p377_p6, %p371_p3 }
  0x11   :  { %381 = shalt.err (!%p378_p7)
}
  0x12   :  { %s457_s22 = smov 128   ;;  %s458_s23 = smov 8  }
  0x13   :  { %24 = dma.hbm_to_vmem [thread:$0]  %s588_s0, 256, %s19_s13, [#allocation3], %s457_s22, %s457_s22, %s458_s23  }
  0x14   :  { %s459_s26 = smov [#allocation5]   ;;  %s382_s30 = scalar_lea.hbm %s589_s1, 256 }
  0x15   :  { %s30_s27 = sshll.u32 %s459_s26, 4  ;;  %p383_p8 = scmp.ne.s32.totalorder %s589_s1, %s382_s30  ;;  %s31_s27 = int_to_ptr.vmem [resolvable:$true] %s30_s27 }
  0x16   :  { %p386_p9 = scmp.lt.u32.totalorder %s382_s30, %s589_s1 }
  0x18   :  { %p388_p10 = pnand %p386_p9, %p383_p8 }
  0x1a   :  { %391 = shalt.err (!%p388_p10)
}
  0x1b   :  { %s392_s8 = scalar_lea.vmem %s31_s27, 256  ;;  %p397_p12 = scmp.lt.s32.totalorder %s31_s27, %s31_s27 }
  0x1c   :  { %p393_p11 = scmp.ne.s32.totalorder %s31_s27, %s392_s8  ;;  %p398_p13 = scmp.lt.s32.totalorder %s392_s8, %s392_s8 }
  0x1e   :  { %p399_p0 = por %p398_p13, %p397_p12 }
  0x20   :  { %p400_p1 = pnand %p399_p0, %p393_p11 }
  0x22   :  { %403 = shalt.err (!%p400_p1)
}
  0x23   :  { %36 = dma.hbm_to_vmem [thread:$0]  %s589_s1, 256, %s31_s27, [#allocation6], %s457_s22, %s457_s22, %s458_s23  }
  0x24   :  { %448 = dma.done.wait [#allocation3], 256  }
  0x25   :  { %449 = vsyncadd [#allocation3], 4294967040 }
  0x26   :  { %450 = dma.done.wait [#allocation6], 256  }
  0x27   :  { %451 = vsyncadd [#allocation6], 4294967040  ;;  %v43_v0 = vld [vmem:[#allocation2] sm:$0xff]  ;;  %v45_v1 = vld [vmem:[#allocation2 + $0x8] sm:$0xff]  ;;  %v59_v5 = vlaneseq  ;;  %vm154_vm2 = vcmask 64512   ;;  %s461_s10 = smov [#allocation7]  }
  0x28   :  { %v46_v2 = vadd.f32 %v45_v1, %v43_v0  ;;  %v65_v7 = vld [vmem:[#allocation5] sm:$0xff]  ;;  %v66_v20 = vld [vmem:[#allocation5 + $0x8] sm:$0xff]  ;;  %s309_s11 = sshll.u32 %s461_s10, 4  ;;  %s310_s11 = int_to_ptr.vmem [resolvable:$true] %s309_s11 }
  0x29   :  { %v507_v6 = vand.u32 127, %v59_v5  ;;  %v145_v39 = vshrl.u32 %v59_v5, 7  ;;  %s404_s12 = scalar_lea.vmem %s310_s11, 16  ;;  %s408_s13 = scalar_lea.vmem %s310_s11, 32 }
  0x2a   :  { %v47_v3 = vmul.f32 0.5, %v46_v2  ;;  %p405_p2 = scmp.ne.s32.totalorder %s310_s11, %s404_s12  ;;  %p409_p3 = scmp.lt.s32.totalorder %s310_s11, %s310_s11 }
  0x2b   :  { %vm61_vm0 = vcmp.eq.s32.totalorder %v507_v6, 32  ;;  %vm151_vm1 = vcmp.lt.s32.totalorder %v507_v6, 4  ;;  %v184_v40 = vadd.s32 1, %v507_v6  ;;  %v526_v41 = vadd.s32 8, %v145_v39  ;;  %p410_p4 = scmp.lt.s32.totalorder %s408_s13, %s404_s12 }
  0x2c   :  { %v48_v4 = vmul.f32 %v47_v3, %v47_v3  ;;  %v67_v8 = vsel %vm61_vm0, 1.0, %v65_v7  ;;  %v63_v17 = vmul.f32 2.0, %v47_v3  ;;  %v68_v22 = vsel %vm61_vm0, 1.0, %v66_v20 }
  0x2d   :  { %338 = vmatprep.mubr.f32.mxu0 %v67_v8  ;;  %v181_v42 = vmul.u32 3, %v507_v6  ;;  %v185_v43 = vmul.u32 3, %v184_v40  ;;  %p411_p5 = por %p410_p4, %p409_p3 }
  0x2e   :  { %49 = vadd.xlane.f32.xlu0 %v48_v4 }
  0x2f   :  { %vm183_vm3 = vcmp.ge.s32.totalorder %v526_v41, %v181_v42  ;;  %vm187_vm4 = vcmp.lt.s32.totalorder %v526_v41, %v185_v43  ;;  %vm182_vm7 = vcmp.ge.s32.totalorder %v145_v39, %v181_v42  ;;  %vm186_vm8 = vcmp.lt.s32.totalorder %v145_v39, %v185_v43  ;;  %p412_p6 = pnand %p411_p5, %p405_p2 }
  0x30   :  { %vm189_vm5 = vmand %vm183_vm3, %vm187_vm4  ;;  %vm286_vm4 = vcmask 7168  }
  0x31   :  { %vm533_vm6 = vmand %vm189_vm5, %vm151_vm1 }
  0x32   :  { %v207_v47 = vsel %vm533_vm6, %v507_v6, 8  ;;  %vm188_vm9 = vmand %vm182_vm7, %vm186_vm8 }
  0x33   :  { %v223_v51 = vsel %vm154_vm2, %v207_v47, 2147483647  ;;  %vm543_vm10 = vmand %vm188_vm9, %vm151_vm1 }
  0x34   :  { %v206_v54 = vsel %vm543_vm10, %v507_v6, 8  ;;  %v225_v57 = vshra.s32 %v223_v51, 16  ;;  %v224_v2 = vand.u32 65535, %v223_v51 }
  0x35   :  { %v208_v59 = vsel %vm154_vm2, %v206_v54, 2147483647 }
  0x36   :  { %v227_v63 = vcvt.s32.f32 %v225_v57  ;;  %v210_v0 = vshra.s32 %v208_v59, 16  ;;  %v226_v7 = vcvt.s32.f32 %v224_v2  ;;  %v209_v8 = vand.u32 65535, %v208_v59 }
  0x38   :  { %v212_v1 = vcvt.s32.f32 %v210_v0 }
  0xbb   :  { %v50_v9 = vpop.xlane.xlu0 %49 }
  0xbc   :  { %v51_v10 = vrot.slane %v50_v9, 4 }
  0xbe   :  { %v52_v11 = vadd.f32 %v51_v10, %v50_v9 }
  0xc0   :  { %v53_v12 = vrot.slane %v52_v11, 2 }
  0xc2   :  { %v54_v13 = vadd.f32 %v53_v12, %v52_v11 }
  0xc4   :  { %v55_v14 = vrot.slane %v54_v13, 1 }
  0xc6   :  { %v56_v15 = vadd.f32 %v55_v14, %v54_v13 }
  0xc8   :  { %v57_v16 = vmul.f32 0.25, %v56_v15 }
  0xca   :  { %v58_v18 = vsub.f32 %v50_v9, %v57_v16  ;;  %v211_v16 = vcvt.s32.f32 %v209_v8 }
  0xcc   :  { %v62_v19 = vsub.f32 0.0, %v58_v18 }
  0xce   :  { %v64_v21 = vsel %vm61_vm0, %v62_v19, %v63_v17 }
  0xcf   :  { %336 = vmatprep.subr.mxu0 %v64_v21 }
  0xd0   :  { %337 = vmatpush3.xpose.msra.mxu0 %v64_v21 }
  0xd3   :  { %339 = vmatmul.mubr.f32.vlgmr.msra.gmra.mrb[0].mxu0 %v68_v22 }
 0x1a6   :  { %v340_v23 = vpop.f32.mrb[0].mxu0 }
 0x1a7   :  { %v153_v24 = vsel %vm151_vm1, %v340_v23, -1e+30  ;;  %v135_v25 = vpop.f32.mrb[1].mxu0 }
 0x1a8   :  { %v152_v26 = vsel %vm151_vm1, %v135_v25, -1e+30  ;;  %v158_v27 = vsel %vm154_vm2, %v153_v24, -inf  ;;  %vm239_vm1 = vcmp.lt.s32.totalorder %v526_v41, 12 }
 0x1a9   :  { %159 = vmax.xlane.f32.xlu0 %v158_v27  ;;  %v155_v28 = vsel %vm154_vm2, %v152_v26, -inf }
 0x1aa   :  { %156 = vmax.xlane.f32.xlu1 %v155_v28 }
 0x236   :  { %v160_v29 = vpop.xlane.xlu0 %159 }
 0x237   :  { %v162_v30 = vsub.f32 %v153_v24, %v160_v29  ;;  %v157_v31 = vpop.xlane.xlu1 %156 }
 0x238   :  { %v161_v32 = vsub.f32 %v152_v26, %v157_v31 }
 0x239   :  { %v165_v33 = vmul.f32 1.442695, %v162_v30 }
 0x23a   :  { %v163_v34 = vmul.f32 1.442695, %v161_v32 }
 0x23b   :  { %352 = vpow2.f32 %v165_v33 }
 0x23c   :  { %354 = vpow2.f32 %v163_v34 }
 0x245   :  { %v353_v35 = vpop.eup %352 }
 0x246   :  { %v355_v36 = vpop.eup %354  ;;  %v170_v37 = vsel %vm154_vm2, %v353_v35, 0.0 }
 0x247   :  { %171 = vadd.xlane.f32.xlu1 %v170_v37  ;;  %v167_v38 = vsel %vm154_vm2, %v355_v36, 0.0 }
 0x248   :  { %168 = vadd.xlane.f32.xlu0 %v167_v38 }
 0x2d4   :  { %v172_v44 = vpop.xlane.xlu1 %171 }
 0x2d5   :  { %356 = vlog2.f32 %v172_v44  ;;  %v169_v45 = vpop.xlane.xlu0 %168 }
 0x2d6   :  { %358 = vlog2.f32 %v169_v45 }
 0x2df   :  { %v357_v48 = vpop.eup %356 }
 0x2e0   :  { %v359_v49 = vpop.eup %358  ;;  %v176_v50 = vmul.f32 0.6931472, %v357_v48 }
 0x2e1   :  { %v174_v53 = vmul.f32 0.6931472, %v359_v49 }
 0x2e2   :  { %v178_v55 = vadd.f32 %v176_v50, %v160_v29 }
 0x2e3   :  { %v177_v56 = vadd.f32 %v174_v53, %v157_v31 }
 0x2e4   :  { %v180_v58 = vsub.f32 %v153_v24, %v178_v55 }
 0x2e5   :  { %v179_v60 = vsub.f32 %v152_v26, %v177_v56 }
 0x2e6   :  { %v243_v61 = vsel %vm154_vm2, %v180_v58, -inf  ;;  %v193_v19 = vsel %vm533_vm6, %v180_v58, 0.0 }
 0x2e7   :  { %244 = vmax.xlane.f32.xlu1 %v243_v61  ;;  %v240_v62 = vsel %vm154_vm2, %v179_v60, -inf  ;;  %v192_v18 = vsel %vm543_vm10, %v179_v60, 0.0  ;;  %v195_v23 = vsel %vm154_vm2, %v193_v19, 0.0 }
 0x2e8   :  { %241 = vmax.xlane.f32.xlu0 %v240_v62  ;;  %v194_v22 = vsel %vm154_vm2, %v192_v18, 0.0  ;;  %v460_v62 = vmov 0.0  }
 0x2e9   :  { %v196_v24 = vadd.f32 %v195_v23, %v194_v22 }
 0x2eb   :  { %228 = vmin.xlane.f32.xlu1 %v227_v63 }
 0x2ef   :  { %213 = vmin.xlane.f32.xlu1 %v212_v1 }
 0x374   :  { %v245_v3 = vpop.xlane.xlu1 %244 }
 0x375   :  { %vm247_vm11 = vcmp.eq.f32.partialorder %v180_v58, %v245_v3  ;;  %v242_v4 = vpop.xlane.xlu0 %241 }
 0x376   :  { %v249_v5 = vsel %vm247_vm11, %v507_v6, 8  ;;  %vm246_vm12 = vcmp.eq.f32.partialorder %v179_v60, %v242_v4 }
 0x377   :  { %v265_v9 = vsel %vm154_vm2, %v249_v5, 2147483647  ;;  %v248_v10 = vsel %vm246_vm12, %v507_v6, 8 }
 0x378   :  { %v250_v11 = vsel %vm154_vm2, %v248_v10, 2147483647  ;;  %v229_v12 = vpop.xlane.xlu1 %228  ;;  %v267_v13 = vshra.s32 %v265_v9, 16  ;;  %v266_v26 = vand.u32 65535, %v265_v9 }
 0x379   :  { %vm230_vm13 = vcmp.eq.f32.partialorder %v227_v63, %v229_v12  ;;  %v252_v17 = vshra.s32 %v250_v11, 16  ;;  %v235_v25 = vcvt.f32.s32 %v229_v12  ;;  %v251_v32 = vand.u32 65535, %v250_v11 }
 0x37a   :  { %v231_v14 = vsel %vm230_vm13, %v226_v7, inf  ;;  %v269_v15 = vcvt.s32.f32 %v267_v13  ;;  %v268_v31 = vcvt.s32.f32 %v266_v26 }
 0x37b   :  { %232 = vmin.xlane.f32.xlu1 %v231_v14  ;;  %v254_v21 = vcvt.s32.f32 %v252_v17  ;;  %v236_v27 = vshll.u32 %v235_v25, 16  ;;  %v253_v37 = vcvt.s32.f32 %v251_v32 }
 0x37c   :  { %270 = vmin.xlane.f32.xlu0 %v269_v15  ;;  %v214_v20 = vpop.xlane.xlu1 %213 }
 0x37d   :  { %vm215_vm14 = vcmp.eq.f32.partialorder %v212_v1, %v214_v20  ;;  %v220_v49 = vcvt.f32.s32 %v214_v20 }
 0x37e   :  { %v216_v6 = vsel %vm215_vm14, %v211_v16, inf }
 0x37f   :  { %217 = vmin.xlane.f32.xlu1 %v216_v6  ;;  %v221_v54 = vshll.u32 %v220_v49, 16 }
 0x380   :  { %255 = vmin.xlane.f32.xlu0 %v254_v21 }
 0x383   :  { %197 = vadd.xlane.f32.xlu1 %v196_v24 }
 0x408   :  { %v233_v28 = vpop.xlane.xlu1 %232 }
 0x409   :  { %v234_v29 = vcvt.f32.s32 %v233_v28  ;;  %v271_v30 = vpop.xlane.xlu0 %270 }
 0x40a   :  { %vm272_vm15 = vcmp.eq.f32.partialorder %v269_v15, %v271_v30  ;;  %v277_v48 = vcvt.f32.s32 %v271_v30 }
 0x40b   :  { %v237_v33 = vadd.s32 %v236_v27, %v234_v29  ;;  %v273_v34 = vsel %vm272_vm15, %v268_v31, inf }
 0x40c   :  { %274 = vmin.xlane.f32.xlu0 %v273_v34  ;;  %v218_v35 = vpop.xlane.xlu1 %217  ;;  %v278_v51 = vshll.u32 %v277_v48, 16 }
 0x40d   :  { %v256_v36 = vpop.xlane.xlu0 %255  ;;  %v219_v55 = vcvt.f32.s32 %v218_v35 }
 0x40e   :  { %vm257_vm0 = vcmp.eq.f32.partialorder %v254_v21, %v256_v36  ;;  %v262_v52 = vcvt.f32.s32 %v256_v36 }
 0x40f   :  { %v258_v38 = vsel %vm257_vm0, %v253_v37, inf  ;;  %v222_v60 = vadd.s32 %v221_v54, %v219_v55 }
 0x410   :  { %259 = vmin.xlane.f32.xlu0 %v258_v38  ;;  %v198_v39 = vpop.xlane.xlu1 %197  ;;  %v263_v58 = vshll.u32 %v262_v52, 16 }
 0x411   :  { %v199_v40 = vrot.slane %v198_v39, 4 }
 0x413   :  { %v200_v42 = vadd.f32 %v199_v40, %v198_v39 }
 0x415   :  { %v201_v43 = vrot.slane %v200_v42, 2 }
 0x417   :  { %v202_v44 = vadd.f32 %v201_v43, %v200_v42 }
 0x419   :  { %v203_v45 = vrot.slane %v202_v44, 1 }
 0x41b   :  { %v204_v46 = vadd.f32 %v203_v45, %v202_v44 }
 0x41d   :  { %341 = vpush %v204_v46 }
 0x44e   :  { %s342_s1 = spop %341 }
 0x44f   :  { %v299_v47 = vstv %s342_s1 }
 0x450   :  { %300 = vst [vmem:[#allocation7] sm:$0x1] %v299_v47 }
 0x499   :  { %v275_v50 = vpop.xlane.xlu0 %274 }
 0x49a   :  { %v276_v53 = vcvt.f32.s32 %v275_v50 }
 0x49c   :  { %v279_v56 = vadd.s32 %v278_v51, %v276_v53 }
 0x49d   :  { %v260_v57 = vpop.xlane.xlu0 %259 }
 0x49e   :  { %vm281_vm2 = vcmp.eq.s32.totalorder %v279_v56, %v237_v33  ;;  %v261_v59 = vcvt.f32.s32 %v260_v57 }
 0x49f   :  { %vm283_vm3 = vmand %vm281_vm2, %vm239_vm1 }
 0x4a0   :  { %v264_v61 = vadd.s32 %v263_v58, %v261_v59  ;;  %v285_v63 = vsel %vm283_vm3, 1.0, %v460_v62 }
 0x4a1   :  { %v288_v2 = vsel %vm286_vm4, %v285_v63, 0.0 }
 0x4a2   :  { %vm280_vm5 = vcmp.eq.s32.totalorder %v264_v61, %v222_v60 }
 0x4a3   :  { %v284_v0 = vsel %vm280_vm5, 1.0, %v460_v62 }
 0x4a4   :  { %v287_v1 = vsel %vm286_vm4, %v284_v0, 0.0 }
 0x4a5   :  { %v289_v3 = vadd.f32 %v288_v2, %v287_v1 }
 0x4a7   :  { %290 = vadd.xlane.f32.xlu0 %v289_v3 }
 0x4a8   :  { %415 = shalt.err (!%p412_p6)
}
 0x4a9   :  { %s416_s16 = scalar_lea.hbm %s590_s2, 16 }
 0x4aa   :  { %p417_p7 = scmp.ne.s32.totalorder %s590_s2, %s416_s16  ;;  %p420_p8 = scmp.lt.u32.totalorder %s416_s16, %s590_s2 }
 0x4ac   :  { %p422_p9 = pnand %p420_p8, %p417_p7 }
 0x4ae   :  { %425 = shalt.err (!%p422_p9)
}
 0x4af   :  { %312 = dma.vmem_to_hbm [thread:$0]  %s310_s11, 16, %s590_s2, [#allocation4]  }
 0x4b0   :  { %s462_s23 = smov [#allocation8]  }
 0x4b1   :  { %s319_s24 = sshll.u32 %s462_s23, 4  ;;  %s320_s24 = int_to_ptr.vmem [resolvable:$true] %s319_s24 }
 0x4b2   :  { %s426_s26 = scalar_lea.vmem %s320_s24, 16  ;;  %s430_s27 = scalar_lea.vmem %s320_s24, 32 }
 0x4b3   :  { %p427_p10 = scmp.ne.s32.totalorder %s320_s24, %s426_s26  ;;  %p431_p11 = scmp.lt.s32.totalorder %s320_s24, %s320_s24 }
 0x4b4   :  { %p432_p12 = scmp.lt.s32.totalorder %s430_s27, %s426_s26 }
 0x4b6   :  { %p433_p13 = por %p432_p12, %p431_p11 }
 0x4b8   :  { %p434_p0 = pnand %p433_p13, %p427_p10 }
 0x534   :  { %v291_v41 = vpop.xlane.xlu0 %290 }
 0x535   :  { %v292_v4 = vrot.slane %v291_v41, 4 }
 0x537   :  { %v293_v5 = vadd.f32 %v292_v4, %v291_v41 }
 0x539   :  { %v294_v7 = vrot.slane %v293_v5, 2 }
 0x53b   :  { %v295_v8 = vadd.f32 %v294_v7, %v293_v5 }
 0x53d   :  { %v296_v9 = vrot.slane %v295_v8, 1 }
 0x53f   :  { %v297_v10 = vadd.f32 %v296_v9, %v295_v8 }
 0x541   :  { %343 = vpush %v297_v10 }
 0x572   :  { %s344_s25 = spop %343 }
 0x573   :  { %v301_v11 = vstv %s344_s25 }
 0x574   :  { %302 = vst [vmem:[#allocation8] sm:$0x1] %v301_v11 }
 0x575   :  { %437 = shalt.err (!%p434_p0)
}
 0x576   :  { %s438_s29 = scalar_lea.hbm %s591_s3, 16 }
 0x577   :  { %p439_p1 = scmp.ne.s32.totalorder %s591_s3, %s438_s29  ;;  %p442_p2 = scmp.lt.u32.totalorder %s438_s29, %s591_s3 }
 0x579   :  { %p444_p3 = pnand %p442_p2, %p439_p1 }
 0x57b   :  { %447 = shalt.err (!%p444_p3)
}
 0x57c   :  { %322 = dma.vmem_to_hbm [thread:$0]  %s320_s24, 16, %s591_s3, [#allocation9]  }
 0x57d   :  { %452 = dma.done.wait [#allocation4], 16  }
 0x57e   :  { %453 = vsyncadd [#allocation4], 4294967280 }
 0x57f   :  { %454 = dma.done.wait [#allocation9], 16  }
 0x580   :  { %455 = vsyncadd [#allocation9], 4294967280 }
 0x581   :  { %329 = vsyncpa [#allocation3], 1 }
 0x582   :  { %330 = vsyncpa [#allocation6], 1 }
 0x583   :  { %331 = vsyncpa [#allocation4], 1 }
 0x584   :  { %332 = vsyncpa [#allocation9], 1 }

</bundles_post_ra>
